<compile_context>
chip_gen: v7x
topology: tpu7x:2x2x1
jax: 0.10.0
libtpu: 0.0.40
codegen_flags: <defaults>
</compile_context>

<pallas_src>
import functools

import jax
import jax.numpy as jnp
from jax.experimental import pallas as pl
from jax.experimental.pallas import tpu as pltpu


def _round_up(x, m):
    return ((x + m - 1) // m) * m


def _pad_to(x, shape):
    return jnp.pad(x, [(0, s - d) for d, s in zip(x.shape, shape)])


def mpnn_kernel(hV_ref, hE_ref, mask_ref,
                w1v_ref, w1e_ref, b1_ref,
                w2_ref, b2_ref,
                w3_ref, b3_ref,
                out_ref, *, compute_dtype):
    hV = hV_ref[...]                     # [M, Hp]       f32 (kept f32 for residual)
    hE = hE_ref[...]                     # [M, Kp, Inp]  compute dtype
    mask = mask_ref[...]                 # [M, Kp]       f32, pre-scaled by 1/K

    M, Kp, Inp = hE.shape
    Hp = hV.shape[-1]

    # Layer 1: concat(hv, he) @ W1 == hv @ W1_v + he @ W1_e.
    # b1 folded into the shared h_V term (hoisted: no [M,K,H] bias broadcast).
    xv = jnp.dot(hV.astype(compute_dtype), w1v_ref[...],
                 preferred_element_type=jnp.float32) + b1_ref[...]        # [M, Hp]
    xe = jnp.dot(hE.reshape(M * Kp, Inp), w1e_ref[...],
                 preferred_element_type=jnp.float32)                      # [M*Kp, Hp]
    x = jnp.maximum(xe.reshape(M, Kp, Hp) + xv[:, None, :], 0.0)          # [M, Kp, Hp]

    # Layer 2
    x = jnp.dot(x.reshape(M * Kp, Hp).astype(compute_dtype), w2_ref[...],
                preferred_element_type=jnp.float32) + b2_ref[...]         # [M*Kp, Hp]
    x = jnp.maximum(x, 0.0)

    # Layer 3
    x = jnp.dot(x.astype(compute_dtype), w3_ref[...],
                preferred_element_type=jnp.float32) + b3_ref[...]         # [M*Kp, Hp]

    # Masked mean over neighbors (1/K already folded into mask) + residual.
    h_msg = x.reshape(M, Kp, Hp) * mask[:, :, None]                       # [M, Kp, Hp]
    dh = jnp.sum(h_msg, axis=1)                                           # [M, Hp]
    out_ref[...] = (hV + dh).astype(out_ref.dtype)


def mpnn_layer(h_V, h_E, mask_attend, params, *,
               node_tile=256, compute_dtype=jnp.bfloat16):
    """h_V: [B,N,H], h_E: [B,N,K,In], mask_attend: [B,N,K] -> [B,N,H]."""
    B, N, H = h_V.shape
    K, In = h_E.shape[-2], h_E.shape[-1]
    BN = B * N

    # Padded sizes: lane dims -> multiples of 128, neighbor dim -> multiple of 8
    # (keeps in-kernel reshapes on (8,128) tile boundaries), node dim -> multiple
    # of node_tile (node_tile itself a multiple of 8, capped at the node count).
    Hp = _round_up(H, 128)
    Inp = _round_up(In, 128)
    Kp = _round_up(K, 8)
    node_tile = _round_up(max(8, min(node_tile, _round_up(BN, 8))), 8)
    BNp = _round_up(BN, node_tile)
    grid = (BNp // node_tile,)

    wdt = jnp.dtype(compute_dtype)

    hV_f = h_V.reshape(BN, H).astype(jnp.float32)
    hE_f = h_E.reshape(BN, K, In).astype(compute_dtype)
    # Fold 1/K (the ORIGINAL K, not the padded one) into the mask; padded
    # neighbors / nodes carry a zero mask so they contribute nothing.
    mask_f = mask_attend.reshape(BN, K).astype(jnp.float32) * (1.0 / K)

    hV_p = _pad_to(hV_f, (BNp, Hp))
    hE_p = _pad_to(hE_f, (BNp, Kp, Inp))
    mask_p = _pad_to(mask_f, (BNp, Kp))

    w1v, w1e, b1, w2, b2, w3, b3 = params
    w1v_p = _pad_to(w1v.astype(jnp.float32), (Hp, Hp)).astype(wdt)
    w1e_p = _pad_to(w1e.astype(jnp.float32), (Inp, Hp)).astype(wdt)
    w2_p = _pad_to(w2.astype(jnp.float32), (Hp, Hp)).astype(wdt)
    w3_p = _pad_to(w3.astype(jnp.float32), (Hp, Hp)).astype(wdt)
    b1_p = _pad_to(b1.astype(jnp.float32), (1, Hp))    # biases stay f32 (added post-acc)
    b2_p = _pad_to(b2.astype(jnp.float32), (1, Hp))
    b3_p = _pad_to(b3.astype(jnp.float32), (1, Hp))

    full = lambda i: (0, 0)

    flops = 2 * BNp * Hp * Hp + 2 * BNp * Kp * (Inp * Hp + 2 * Hp * Hp)
    bytes_accessed = (hV_p.size * 4 + hE_p.size * wdt.itemsize + mask_p.size * 4
                      + BNp * Hp * 4
                      + (w1v_p.size + w1e_p.size + w2_p.size + w3_p.size) * wdt.itemsize
                      + (b1_p.size + b2_p.size + b3_p.size) * 4)

    out_p = pl.pallas_call(
        functools.partial(mpnn_kernel, compute_dtype=compute_dtype),
        out_shape=jax.ShapeDtypeStruct((BNp, Hp), jnp.float32),
        grid_spec=pltpu.PrefetchScalarGridSpec(
            num_scalar_prefetch=0,
            grid=grid,
            in_specs=[
                pl.BlockSpec((node_tile, Hp), lambda i: (i, 0)),
                pl.BlockSpec((node_tile, Kp, Inp), lambda i: (i, 0, 0)),
                pl.BlockSpec((node_tile, Kp), lambda i: (i, 0)),
                pl.BlockSpec((Hp, Hp), full),    # W1_v
                pl.BlockSpec((Inp, Hp), full),   # W1_e
                pl.BlockSpec((1, Hp), full),     # b1
                pl.BlockSpec((Hp, Hp), full),    # W2
                pl.BlockSpec((1, Hp), full),     # b2
                pl.BlockSpec((Hp, Hp), full),    # W3
                pl.BlockSpec((1, Hp), full),     # b3
            ],
            out_specs=pl.BlockSpec((node_tile, Hp), lambda i: (i, 0)),
        ),
        compiler_params=pltpu.CompilerParams(
            dimension_semantics=("parallel",),
            vmem_limit_bytes=48 * 1024 * 1024),
        cost_estimate=pl.CostEstimate(flops=int(flops), transcendentals=0,
                                      bytes_accessed=int(bytes_accessed)),
    )(hV_p, hE_p, mask_p, w1v_p, w1e_p, b1_p, w2_p, b2_p, w3_p, b3_p)

    return out_p[:BN, :H].reshape(B, N, H).astype(h_V.dtype)


def make_params(key, num_hidden, num_in, dtype=jnp.float32):
    """Deterministic init of the 3-layer MLP `W`. Weights stored as (in, out)."""
    k1, k2, k3, k4, k5, k6 = jax.random.split(key, 6)
    s1 = 1.0 / jnp.sqrt(num_hidden + num_in)
    s2 = 1.0 / jnp.sqrt(num_hidden)
    w1 = jax.random.uniform(k1, (num_hidden + num_in, num_hidden), dtype, -s1, s1)
    b1 = jax.random.uniform(k2, (1, num_hidden), dtype, -s1, s1)
    w2 = jax.random.uniform(k3, (num_hidden, num_hidden), dtype, -s2, s2)
    b2 = jax.random.uniform(k4, (1, num_hidden), dtype, -s2, s2)
    w3 = jax.random.uniform(k5, (num_hidden, num_hidden), dtype, -s2, s2)
    b3 = jax.random.uniform(k6, (1, num_hidden), dtype, -s2, s2)
    # Split W1 into the part applied to h_V (first H rows) and to h_E (rest).
    w1v, w1e = w1[:num_hidden], w1[num_hidden:]
    return (w1v, w1e, b1, w2, b2, w3, b3)


def mpnn_layer_ref(h_V, h_E, mask_attend, params):
    """Pure-JAX f32 reference matching the PyTorch forward (eval mode)."""
    w1v, w1e, b1, w2, b2, w3, b3 = params
    w1 = jnp.concatenate([w1v, w1e], axis=0)
    K = h_E.shape[-2]
    h_V_expand = jnp.broadcast_to(h_V[..., None, :],
                                  h_V.shape[:-1] + (K, h_V.shape[-1]))
    h_EV = jnp.concatenate([h_V_expand, h_E], axis=-1)
    x = jnp.maximum(h_EV @ w1 + b1[0], 0.0)
    x = jnp.maximum(x @ w2 + b2[0], 0.0)
    x = x @ w3 + b3[0]
    h_message = x * mask_attend[..., None]
    dh = jnp.mean(h_message, axis=-2)
    return h_V + dh


if __name__ == "__main__":
    key = jax.random.PRNGKey(0)

    # Config 1: toy shapes implied by the module.
    B, N, K = 2, 8, 8
    num_hidden, num_in = 32, 32
    kp, kv, ke, km = jax.random.split(key, 4)
    params = make_params(kp, num_hidden, num_in)
    h_V = jax.random.normal(kv, (B, N, num_hidden), jnp.float32)
    h_E = jax.random.normal(ke, (B, N, K, num_in), jnp.float32)
    mask_attend = (jax.random.uniform(km, (B, N, K)) > 0.3).astype(jnp.float32)

    ref = mpnn_layer_ref(h_V, h_E, mask_attend, params)

    # f32 compute path: tight correctness check.
    out_f32 = jax.block_until_ready(
        mpnn_layer(h_V, h_E, mask_attend, params, compute_dtype=jnp.float32))
    assert out_f32.shape == (B, N, num_hidden)
    assert jnp.allclose(out_f32, ref, atol=1e-4, rtol=1e-4), "f32 mismatch vs ref"

    # bf16 MXU fast path: loose check vs the f32 reference.
    out_bf16 = jax.block_until_ready(
        mpnn_layer(h_V, h_E, mask_attend, params, compute_dtype=jnp.bfloat16))
    assert out_bf16.shape == (B, N, num_hidden)
    assert jnp.allclose(out_bf16, ref, atol=1e-1, rtol=1e-1), "bf16 mismatch vs ref"

    # Config 2: ragged shapes exercising K / node-count padding + multi-step grid.
    B2, N2, K2 = 3, 25, 7
    kv2, ke2, km2 = jax.random.split(jax.random.PRNGKey(1), 3)
    h_V2 = jax.random.normal(kv2, (B2, N2, num_hidden), jnp.float32)
    h_E2 = jax.random.normal(ke2, (B2, N2, K2, num_in), jnp.float32)
    mask2 = (jax.random.uniform(km2, (B2, N2, K2)) > 0.3).astype(jnp.float32)
    ref2 = mpnn_layer_ref(h_V2, h_E2, mask2, params)
    out2 = jax.block_until_ready(
        mpnn_layer(h_V2, h_E2, mask2, params, node_tile=32,
                   compute_dtype=jnp.float32))
    assert out2.shape == (B2, N2, num_hidden)
    assert jnp.allclose(out2, ref2, atol=1e-4, rtol=1e-4), "padded-config mismatch"

    print("KERNEL_OK")
</pallas_src>

<mosaic_0001>
module attributes {stable_mosaic.version = 11 : i64} {
  func.func @mpnn_kernel(%arg0: i32, %arg1: memref<16x128xf32, #tpu.memory_space<vmem>>, %arg2: memref<16x8x128xf32, #tpu.memory_space<vmem>>, %arg3: memref<16x8xf32, #tpu.memory_space<vmem>>, %arg4: memref<128x128xf32, #tpu.memory_space<vmem>>, %arg5: memref<128x128xf32, #tpu.memory_space<vmem>>, %arg6: memref<1x128xf32, #tpu.memory_space<vmem>>, %arg7: memref<128x128xf32, #tpu.memory_space<vmem>>, %arg8: memref<1x128xf32, #tpu.memory_space<vmem>>, %arg9: memref<128x128xf32, #tpu.memory_space<vmem>>, %arg10: memref<1x128xf32, #tpu.memory_space<vmem>>, %arg11: memref<16x128xf32, #tpu.memory_space<vmem>>) attributes {dimension_semantics = [#tpu.dimension_semantics<parallel>], iteration_bounds = array<i64: 1>, scalar_prefetch = 0 : i64, scratch_operands = 0 : i64, tpu.core_type = #tpu.core_type<tc>, window_params = [{transform_indices = @transform_0, window_bounds = array<i64: 16, 128>}, {transform_indices = @transform_1, window_bounds = array<i64: 16, 8, 128>}, {transform_indices = @transform_2, window_bounds = array<i64: 16, 8>}, {pipeline_mode = #tpu.pipeline_mode<synchronous>, transform_indices = @transform_3, window_bounds = array<i64: 128, 128>}, {pipeline_mode = #tpu.pipeline_mode<synchronous>, transform_indices = @transform_4, window_bounds = array<i64: 128, 128>}, {pipeline_mode = #tpu.pipeline_mode<synchronous>, transform_indices = @transform_5, window_bounds = array<i64: 1, 128>}, {pipeline_mode = #tpu.pipeline_mode<synchronous>, transform_indices = @transform_6, window_bounds = array<i64: 128, 128>}, {pipeline_mode = #tpu.pipeline_mode<synchronous>, transform_indices = @transform_7, window_bounds = array<i64: 1, 128>}, {pipeline_mode = #tpu.pipeline_mode<synchronous>, transform_indices = @transform_8, window_bounds = array<i64: 128, 128>}, {pipeline_mode = #tpu.pipeline_mode<synchronous>, transform_indices = @transform_9, window_bounds = array<i64: 1, 128>}, {transform_indices = @transform_10, window_bounds = array<i64: 16, 128>}]} {
    %c0 = arith.constant 0 : index
    %c0_0 = arith.constant 0 : index
    %0 = vector.load %arg1[%c0, %c0_0] : memref<16x128xf32, #tpu.memory_space<vmem>>, vector<16x128xf32>
    %c0_1 = arith.constant 0 : index
    %c0_2 = arith.constant 0 : index
    %c0_3 = arith.constant 0 : index
    %1 = vector.load %arg2[%c0_1, %c0_2, %c0_3] : memref<16x8x128xf32, #tpu.memory_space<vmem>>, vector<16x8x128xf32>
    %c0_4 = arith.constant 0 : index
    %c0_5 = arith.constant 0 : index
    %2 = vector.load %arg3[%c0_4, %c0_5] : memref<16x8xf32, #tpu.memory_space<vmem>>, vector<16x8xf32>
    %c0_6 = arith.constant 0 : index
    %c0_7 = arith.constant 0 : index
    %3 = vector.load %arg4[%c0_6, %c0_7] : memref<128x128xf32, #tpu.memory_space<vmem>>, vector<128x128xf32>
    %cst = arith.constant dense<0.000000e+00> : vector<16x128xf32>
    %4 = tpu.matmul %0, %3, %cst {dimension_numbers = #tpu.dot_dimension_numbers<[1], [0], [0], [1], [0, 0, 1, 1], [], []>} : vector<16x128xf32>, vector<128x128xf32>, vector<16x128xf32> -> vector<16x128xf32>
    %c0_8 = arith.constant 0 : index
    %c0_9 = arith.constant 0 : index
    %5 = vector.load %arg6[%c0_8, %c0_9] : memref<1x128xf32, #tpu.memory_space<vmem>>, vector<1x128xf32>
    %6 = vector.broadcast %5 : vector<1x128xf32> to vector<16x128xf32>
    %7 = arith.addf %4, %6 : vector<16x128xf32>
    %8 = vector.shape_cast %1 : vector<16x8x128xf32> to vector<128x128xf32>
    %c0_10 = arith.constant 0 : index
    %c0_11 = arith.constant 0 : index
    %9 = vector.load %arg5[%c0_10, %c0_11] : memref<128x128xf32, #tpu.memory_space<vmem>>, vector<128x128xf32>
    %cst_12 = arith.constant dense<0.000000e+00> : vector<128x128xf32>
    %10 = tpu.matmul %8, %9, %cst_12 {dimension_numbers = #tpu.dot_dimension_numbers<[1], [0], [0], [1], [0, 0, 1, 1], [], []>} : vector<128x128xf32>, vector<128x128xf32>, vector<128x128xf32> -> vector<128x128xf32>
    %11 = vector.shape_cast %10 : vector<128x128xf32> to vector<16x8x128xf32>
    %12 = vector.shape_cast %7 : vector<16x128xf32> to vector<16x1x128xf32>
    %13 = vector.broadcast %12 : vector<16x1x128xf32> to vector<16x8x128xf32>
    %14 = arith.addf %11, %13 : vector<16x8x128xf32>
    %cst_13 = arith.constant 0.000000e+00 : f32
    %15 = vector.broadcast %cst_13 : f32 to vector<16x8x128xf32>
    %16 = arith.maximumf %14, %15 : vector<16x8x128xf32>
    %17 = vector.shape_cast %16 : vector<16x8x128xf32> to vector<128x128xf32>
    %c0_14 = arith.constant 0 : index
    %c0_15 = arith.constant 0 : index
    %18 = vector.load %arg7[%c0_14, %c0_15] : memref<128x128xf32, #tpu.memory_space<vmem>>, vector<128x128xf32>
    %cst_16 = arith.constant dense<0.000000e+00> : vector<128x128xf32>
    %19 = tpu.matmul %17, %18, %cst_16 {dimension_numbers = #tpu.dot_dimension_numbers<[1], [0], [0], [1], [0, 0, 1, 1], [], []>} : vector<128x128xf32>, vector<128x128xf32>, vector<128x128xf32> -> vector<128x128xf32>
    %c0_17 = arith.constant 0 : index
    %c0_18 = arith.constant 0 : index
    %20 = vector.load %arg8[%c0_17, %c0_18] : memref<1x128xf32, #tpu.memory_space<vmem>>, vector<1x128xf32>
    %21 = vector.broadcast %20 : vector<1x128xf32> to vector<128x128xf32>
    %22 = arith.addf %19, %21 : vector<128x128xf32>
    %cst_19 = arith.constant 0.000000e+00 : f32
    %23 = vector.broadcast %cst_19 : f32 to vector<128x128xf32>
    %24 = arith.maximumf %22, %23 : vector<128x128xf32>
    %c0_20 = arith.constant 0 : index
    %c0_21 = arith.constant 0 : index
    %25 = vector.load %arg9[%c0_20, %c0_21] : memref<128x128xf32, #tpu.memory_space<vmem>>, vector<128x128xf32>
    %cst_22 = arith.constant dense<0.000000e+00> : vector<128x128xf32>
    %26 = tpu.matmul %24, %25, %cst_22 {dimension_numbers = #tpu.dot_dimension_numbers<[1], [0], [0], [1], [0, 0, 1, 1], [], []>} : vector<128x128xf32>, vector<128x128xf32>, vector<128x128xf32> -> vector<128x128xf32>
    %c0_23 = arith.constant 0 : index
    %c0_24 = arith.constant 0 : index
    %27 = vector.load %arg10[%c0_23, %c0_24] : memref<1x128xf32, #tpu.memory_space<vmem>>, vector<1x128xf32>
    %28 = vector.broadcast %27 : vector<1x128xf32> to vector<128x128xf32>
    %29 = arith.addf %26, %28 : vector<128x128xf32>
    %30 = vector.shape_cast %29 : vector<128x128xf32> to vector<16x8x128xf32>
    %31 = vector.shape_cast %2 : vector<16x8xf32> to vector<16x8x1xf32>
    %32 = vector.broadcast %31 : vector<16x8x1xf32> to vector<16x8x128xf32>
    %33 = arith.mulf %30, %32 : vector<16x8x128xf32>
    %cst_25 = arith.constant dense<0.000000e+00> : vector<16x128xf32>
    %34 = vector.multi_reduction <add>, %33, %cst_25 [1] : vector<16x8x128xf32> to vector<16x128xf32>
    %35 = arith.addf %0, %34 : vector<16x128xf32>
    %c0_26 = arith.constant 0 : index
    %c0_27 = arith.constant 0 : index
    %36 = vector.load %arg11[%c0_26, %c0_27] : memref<16x128xf32, #tpu.memory_space<vmem>>, vector<16x128xf32>
    tpu.vector_store %arg11[%c0_26, %c0_27], %35 {strides = array<i32>} : memref<16x128xf32, #tpu.memory_space<vmem>>, vector<16x128xf32>,
    return
  }
  func.func @transform_0(%arg0: i32) -> (i32, i32) {
    %c0_i32 = arith.constant 0 : i32
    %c0_i32_0 = arith.constant 0 : i32
    return %arg0, %c0_i32 : i32, i32
  }
  func.func @transform_1(%arg0: i32) -> (i32, i32, i32) {
    %c0_i32 = arith.constant 0 : i32
    %c0_i32_0 = arith.constant 0 : i32
    %c0_i32_1 = arith.constant 0 : i32
    return %arg0, %c0_i32, %c0_i32_0 : i32, i32, i32
  }
  func.func @transform_2(%arg0: i32) -> (i32, i32) {
    %c0_i32 = arith.constant 0 : i32
    %c0_i32_0 = arith.constant 0 : i32
    return %arg0, %c0_i32 : i32, i32
  }
  func.func @transform_3(%arg0: i32) -> (i32, i32) {
    %c0_i32 = arith.constant 0 : i32
    %c0_i32_0 = arith.constant 0 : i32
    %c0_i32_1 = arith.constant 0 : i32
    return %c0_i32, %c0_i32_0 : i32, i32
  }
  func.func @transform_4(%arg0: i32) -> (i32, i32) {
    %c0_i32 = arith.constant 0 : i32
    %c0_i32_0 = arith.constant 0 : i32
    %c0_i32_1 = arith.constant 0 : i32
    return %c0_i32, %c0_i32_0 : i32, i32
  }
  func.func @transform_5(%arg0: i32) -> (i32, i32) {
    %c0_i32 = arith.constant 0 : i32
    %c0_i32_0 = arith.constant 0 : i32
    %c0_i32_1 = arith.constant 0 : i32
    return %c0_i32, %c0_i32_0 : i32, i32
  }
  func.func @transform_6(%arg0: i32) -> (i32, i32) {
    %c0_i32 = arith.constant 0 : i32
    %c0_i32_0 = arith.constant 0 : i32
    %c0_i32_1 = arith.constant 0 : i32
    return %c0_i32, %c0_i32_0 : i32, i32
  }
  func.func @transform_7(%arg0: i32) -> (i32, i32) {
    %c0_i32 = arith.constant 0 : i32
    %c0_i32_0 = arith.constant 0 : i32
    %c0_i32_1 = arith.constant 0 : i32
    return %c0_i32, %c0_i32_0 : i32, i32
  }
  func.func @transform_8(%arg0: i32) -> (i32, i32) {
    %c0_i32 = arith.constant 0 : i32
    %c0_i32_0 = arith.constant 0 : i32
    %c0_i32_1 = arith.constant 0 : i32
    return %c0_i32, %c0_i32_0 : i32, i32
  }
  func.func @transform_9(%arg0: i32) -> (i32, i32) {
    %c0_i32 = arith.constant 0 : i32
    %c0_i32_0 = arith.constant 0 : i32
    %c0_i32_1 = arith.constant 0 : i32
    return %c0_i32, %c0_i32_0 : i32, i32
  }
  func.func @transform_10(%arg0: i32) -> (i32, i32) {
    %c0_i32 = arith.constant 0 : i32
    %c0_i32_0 = arith.constant 0 : i32
    return %arg0, %c0_i32 : i32, i32
  }
}

</mosaic_0001>

<bundles_post_ra>
// kernel: tpu_custom_call.1
= control target key start
LH: loop header
LB: loop body
LE: loop exit
PB: predicated region body
PF: predicated region fallthrough
CT: control target
= control target key end

     0   :  { %15 = vsyncpa [#allocation3], 0  ;;  %s2119_s0 = inlined_call_operand.vmem [shape: f32[16,128], index: 0, kind: input, shape index: {}]   ;;  %s2120_s1 = inlined_call_operand.hbm [shape: f32[16,8,128], index: 1, kind: input, shape index: {}]   ;;  %s2121_s2 = inlined_call_operand.vmem [shape: f32[16,8], index: 2, kind: input, shape index: {}]   ;;  %s2122_s3 = inlined_call_operand.hbm [shape: f32[128,128], index: 3, kind: input, shape index: {}]   ;;  %s2123_s4 = inlined_call_operand.hbm [shape: f32[128,128], index: 4, kind: input, shape index: {}]   ;;  %s2124_s5 = inlined_call_operand.vmem [shape: f32[1,128], index: 5, kind: input, shape index: {}]   ;;  %s2125_s6 = inlined_call_operand.hbm [shape: f32[128,128], index: 6, kind: input, shape index: {}]   ;;  %s2126_s7 = inlined_call_operand.vmem [shape: f32[1,128], index: 7, kind: input, shape index: {}]   ;;  %s2127_s8 = inlined_call_operand.hbm [shape: f32[128,128], index: 8, kind: input, shape index: {}]   ;;  %s2128_s9 = inlined_call_operand.vmem [shape: f32[1,128], index: 9, kind: input, shape index: {}]   ;;  %s2129_s10 = inlined_call_operand.hbm [shape: f32[16,128], index: 10, kind: output, shape index: {}]  }
   0x1   :  { %16 = vsyncpa [#allocation6], 0 }
   0x2   :  { %17 = vsyncpa [#allocation9], 0 }
   0x3   :  { %18 = vsyncpa [#allocation4], 0  ;;  %s1832_s13 = smov [#allocation5]   ;;  %s1833_s15 = smov [#allocation8]  }
   0x4   :  { %s40_s14 = sshll.u32 %s1832_s13, 4  ;;  %s66_s16 = sshll.u32 %s1833_s15, 4  ;;  %s41_s14 = int_to_ptr.vmem [resolvable:$true] %s40_s14  ;;  %s1896_s16 = int_to_ptr.vmem [resolvable:$true] %s66_s16 }
   0x5   :  { %s1692_s19 = scalar_lea.hbm %s2122_s3, 2048 }
   0x6   :  { %p1693_p0 = scmp.ne.s32.totalorder %s2122_s3, %s1692_s19  ;;  %p1696_p1 = scmp.lt.u32.totalorder %s1692_s19, %s2122_s3 }
   0x8   :  { %p1698_p2 = pnand %p1696_p1, %p1693_p0 }
   0xa   :  { %1701 = shalt.err (!%p1698_p2)
}
   0xb   :  { %s1702_s24 = scalar_lea.vmem %s41_s14, 2048  ;;  %p1707_p4 = scmp.lt.s32.totalorder %s41_s14, %s41_s14 }
   0xc   :  { %p1703_p3 = scmp.ne.s32.totalorder %s41_s14, %s1702_s24  ;;  %p1708_p5 = scmp.lt.s32.totalorder %s1702_s24, %s1702_s24 }
   0xe   :  { %p1709_p6 = por %p1708_p5, %p1707_p4 }
  0x10   :  { %p1710_p7 = pnand %p1709_p6, %p1703_p3 }
  0x12   :  { %1713 = shalt.err (!%p1710_p7)
}
  0x13   :  { %s1834_s25 = smov 128   ;;  %s1835_s26 = smov 8  }
  0x14   :  { %46 = dma.hbm_to_vmem [thread:$0]  %s2122_s3, 2048, %s41_s14, [#allocation6], %s1834_s25, %s1834_s25, %s1835_s26  }
  0x15   :  { %s1714_s11 = scalar_lea.hbm %s2125_s6, 2048 }
  0x16   :  { %p1715_p8 = scmp.ne.s32.totalorder %s2125_s6, %s1714_s11  ;;  %p1718_p9 = scmp.lt.u32.totalorder %s1714_s11, %s2125_s6 }
  0x18   :  { %p1720_p10 = pnand %p1718_p9, %p1715_p8 }
  0x1a   :  { %1723 = shalt.err (!%p1720_p10)
}
  0x1b   :  { %s1724_s18 = scalar_lea.vmem %s1896_s16, 2048  ;;  %p1729_p12 = scmp.lt.s32.totalorder %s1896_s16, %s1896_s16 }
  0x1c   :  { %p1725_p11 = scmp.ne.s32.totalorder %s1896_s16, %s1724_s18  ;;  %p1730_p13 = scmp.lt.s32.totalorder %s1724_s18, %s1724_s18 }
  0x1e   :  { %p1731_p0 = por %p1730_p13, %p1729_p12 }
  0x20   :  { %p1732_p1 = pnand %p1731_p0, %p1725_p11 }
  0x22   :  { %1735 = shalt.err (!%p1732_p1)
}
  0x23   :  { %72 = dma.hbm_to_vmem [thread:$0]  %s2125_s6, 2048, %s1896_s16, [#allocation9], %s1834_s25, %s1834_s25, %s1835_s26  }
  0x24   :  { %s1836_s19 = smov [#allocation2]   ;;  %s1837_s21 = smov [#allocation7]  }
  0x25   :  { %s26_s20 = sshll.u32 %s1836_s19, 4  ;;  %s52_s22 = sshll.u32 %s1837_s21, 4  ;;  %s27_s20 = int_to_ptr.vmem [resolvable:$true] %s26_s20  ;;  %s1933_s22 = int_to_ptr.vmem [resolvable:$true] %s52_s22 }
  0x26   :  { %s1736_s27 = scalar_lea.hbm %s2120_s1, 2048 }
  0x27   :  { %p1737_p2 = scmp.ne.s32.totalorder %s2120_s1, %s1736_s27  ;;  %p1740_p3 = scmp.lt.u32.totalorder %s1736_s27, %s2120_s1 }
  0x29   :  { %p1742_p4 = pnand %p1740_p3, %p1737_p2 }
  0x2b   :  { %1745 = shalt.err (!%p1742_p4)
}
  0x2c   :  { %s1746_s6 = scalar_lea.vmem %s27_s20, 2048  ;;  %p1751_p6 = scmp.lt.s32.totalorder %s27_s20, %s27_s20 }
  0x2d   :  { %p1747_p5 = scmp.ne.s32.totalorder %s27_s20, %s1746_s6  ;;  %p1752_p7 = scmp.lt.s32.totalorder %s1746_s6, %s1746_s6 }
  0x2f   :  { %p1753_p8 = por %p1752_p7, %p1751_p6 }
  0x31   :  { %p1754_p9 = pnand %p1753_p8, %p1747_p5 }
  0x33   :  { %1757 = shalt.err (!%p1754_p9)
}
  0x34   :  { %32 = dma.hbm_to_vmem [thread:$0]  %s2120_s1, 2048, %s27_s20, [#allocation3], %s1834_s25, %s1834_s25, %s1835_s26  }
  0x35   :  { %s1758_s17 = scalar_lea.hbm %s2123_s4, 2048 }
  0x36   :  { %p1759_p10 = scmp.ne.s32.totalorder %s2123_s4, %s1758_s17  ;;  %p1762_p11 = scmp.lt.u32.totalorder %s1758_s17, %s2123_s4 }
  0x38   :  { %p1764_p12 = pnand %p1762_p11, %p1759_p10 }
  0x3a   :  { %1767 = shalt.err (!%p1764_p12)
}
  0x3b   :  { %s1768_s21 = scalar_lea.vmem %s1933_s22, 2048  ;;  %p1773_p0 = scmp.lt.s32.totalorder %s1933_s22, %s1933_s22 }
  0x3c   :  { %p1769_p13 = scmp.ne.s32.totalorder %s1933_s22, %s1768_s21  ;;  %p1774_p1 = scmp.lt.s32.totalorder %s1768_s21, %s1768_s21 }
  0x3e   :  { %p1775_p2 = por %p1774_p1, %p1773_p0 }
  0x40   :  { %p1776_p3 = pnand %p1775_p2, %p1769_p13 }
  0x42   :  { %1779 = shalt.err (!%p1776_p3)
}
  0x43   :  { %58 = dma.hbm_to_vmem [thread:$0]  %s2123_s4, 2048, %s1933_s22, [#allocation6], %s1834_s25, %s1834_s25, %s1835_s26  }
  0x44   :  { %s1838_s23 = smov [#allocation10]   ;;  %s1780_s29 = scalar_lea.hbm %s2127_s8, 2048 }
  0x45   :  { %s80_s24 = sshll.u32 %s1838_s23, 4  ;;  %p1781_p4 = scmp.ne.s32.totalorder %s2127_s8, %s1780_s29  ;;  %s81_s24 = int_to_ptr.vmem [resolvable:$true] %s80_s24 }
  0x46   :  { %p1784_p5 = scmp.lt.u32.totalorder %s1780_s29, %s2127_s8 }
  0x48   :  { %p1786_p6 = pnand %p1784_p5, %p1781_p4 }
  0x4a   :  { %1789 = shalt.err (!%p1786_p6)
}
  0x4b   :  { %s1790_s12 = scalar_lea.vmem %s81_s24, 2048  ;;  %p1795_p8 = scmp.lt.s32.totalorder %s81_s24, %s81_s24 }
  0x4c   :  { %p1791_p7 = scmp.ne.s32.totalorder %s81_s24, %s1790_s12  ;;  %p1796_p9 = scmp.lt.s32.totalorder %s1790_s12, %s1790_s12 }
  0x4e   :  { %p1797_p10 = por %p1796_p9, %p1795_p8 }
  0x50   :  { %p1798_p11 = pnand %p1797_p10, %p1791_p7 }
  0x52   :  { %1801 = shalt.err (!%p1798_p11)
}
  0x53   :  { %86 = dma.hbm_to_vmem [thread:$0]  %s2127_s8, 2048, %s81_s24, [#allocation9], %s1834_s25, %s1834_s25, %s1835_s26  }
  0x54   :  { %1824 = dma.done.wait [#allocation3], 2048  }
  0x55   :  { %1825 = vsyncadd [#allocation3], 4294965248 }
  0x56   :  { %1826 = dma.done.wait [#allocation6], 4096  }
  0x57   :  { %1827 = vsyncadd [#allocation6], 4294963200 }
  0x58   :  { %1828 = dma.done.wait [#allocation9], 4096  }
  0x59   :  { %1829 = vsyncadd [#allocation9], 4294963200  ;;  %v124_v0 = vld [vmem:[#allocation5] sm:$0xff]  ;;  %v125_v1 = vld [vmem:[#allocation5 + $0x8] sm:$0xff]  ;;  %vm1187_vm0 = vcmask 1041409   ;;  %vm1189_vm1 = vcmask 1042434  }
  0x5a   :  { %v222_v2 = vld [vmem:[#allocation7] sm:$0xff]  ;;  %v1553_v3 = vpack.c.bf16 %v125_v1, %v124_v0  ;;  %v223_v4 = vld [vmem:[#allocation7 + $0x8] sm:$0xff]  ;;  %v126_v5 = vld [vmem:[#allocation5 + $0x10] sm:$0xff]  ;;  %vm1191_vm2 = vcmask 1043459   ;;  %vm1193_vm3 = vcmask 1044484   ;;  %vm1195_vm4 = vcmask 1045509  }
  0x5b   :  { %v127_v6 = vld [vmem:[#allocation5 + $0x18] sm:$0xff]  ;;  %v1585_v7 = vpack.c.bf16 %v223_v4, %v222_v2  ;;  %v224_v9 = vld [vmem:[#allocation7 + $0x10] sm:$0xff]  ;;  %v128_v11 = vld [vmem:[#allocation5 + $0x20] sm:$0xff]  ;;  %vm1197_vm5 = vcmask 1046534   ;;  %vm1199_vm6 = vcmask 1047559   ;;  %s1840_s24 = smov [#allocation11]  }
  0x5c   :  { %v1557_v8 = vpack.c.bf16 %v127_v6, %v126_v5  ;;  %v225_v10 = vld [vmem:[#allocation7 + $0x18] sm:$0xff]  ;;  %1554 = vmatprep.subr.bf16.mxu0 %v1553_v3  ;;  %v129_v13 = vld [vmem:[#allocation5 + $0x28] sm:$0xff]  ;;  %v226_v14 = vld [vmem:[#allocation7 + $0x20] sm:$0xff]  ;;  %s1219_s27 = sshll.u32 %s1840_s24, 4  ;;  %s1220_s27 = int_to_ptr.vmem [resolvable:$true] %s1219_s27 }
  0x5d   :  { %v1589_v12 = vpack.c.bf16 %v225_v10, %v224_v9  ;;  %v227_v15 = vld [vmem:[#allocation7 + $0x28] sm:$0xff]  ;;  %1586 = vmatprep.subr.bf16.mxu1 %v1585_v7  ;;  %1556 = vmatpush3.bf16.msra.mxu0 %v1553_v3  ;;  %v1561_v16 = vpack.c.bf16 %v129_v13, %v128_v11  ;;  %v130_v18 = vld [vmem:[#allocation5 + $0x30] sm:$0xff]  ;;  %v131_v19 = vld [vmem:[#allocation5 + $0x38] sm:$0xff]  ;;  %s1802_s30 = scalar_lea.vmem %s1220_s27, 256  ;;  %p1807_p13 = scmp.lt.s32.totalorder %s1220_s27, %s1220_s27 }
  0x5e   :  { %1588 = vmatpush3.bf16.msra.mxu1 %v1585_v7  ;;  %1558 = vmatprep.subr.bf16.mxu0 %v1557_v8  ;;  %v1593_v17 = vpack.c.bf16 %v227_v15, %v226_v14  ;;  %v228_v20 = vld [vmem:[#allocation7 + $0x30] sm:$0xff]  ;;  %v229_v21 = vld [vmem:[#allocation7 + $0x38] sm:$0xff]  ;;  %v1565_v22 = vpack.c.bf16 %v131_v19, %v130_v18  ;;  %v132_v24 = vld [vmem:[#allocation5 + $0x40] sm:$0xff]  ;;  %p1803_p12 = scmp.ne.s32.totalorder %s1220_s27, %s1802_s30  ;;  %p1808_p0 = scmp.lt.s32.totalorder %s1802_s30, %s1802_s30 }
  0x5f   :  { %1590 = vmatprep.subr.bf16.mxu1 %v1589_v12  ;;  %v1597_v23 = vpack.c.bf16 %v229_v21, %v228_v20  ;;  %v133_v25 = vld [vmem:[#allocation5 + $0x48] sm:$0xff]  ;;  %v104_v26 = vld [vmem:[%s2119_s0] sm:$0xff]  ;;  %v134_v32 = vld [vmem:[#allocation5 + $0x50] sm:$0xff] }
  0x60   :  { %v230_v27 = vld [vmem:[#allocation7 + $0x40] sm:$0xff]  ;;  %v231_v28 = vld [vmem:[#allocation7 + $0x48] sm:$0xff]  ;;  %1382 = vmatprep.mubr.f32.mxu0 %v104_v26  ;;  %v1569_v30 = vpack.c.bf16 %v133_v25, %v132_v24  ;;  %v135_v33 = vld [vmem:[#allocation5 + $0x58] sm:$0xff]  ;;  %p1809_p1 = por %p1808_p0, %p1807_p13 }
  0x61   :  { %1560 = vmatpush3.bf16.msra.mxu0 %v1557_v8  ;;  %v106_v29 = vld [vmem:[#allocation2] sm:$0xff]  ;;  %v1601_v31 = vpack.c.bf16 %v231_v28, %v230_v27  ;;  %v232_v34 = vld [vmem:[#allocation7 + $0x50] sm:$0xff]  ;;  %v233_v35 = vld [vmem:[#allocation7 + $0x58] sm:$0xff]  ;;  %v1573_v36 = vpack.c.bf16 %v135_v33, %v134_v32 }
  0x62   :  { %1592 = vmatpush3.bf16.msra.mxu1 %v1589_v12  ;;  %1562 = vmatprep.subr.bf16.mxu0 %v1561_v16  ;;  %v1605_v37 = vpack.c.bf16 %v233_v35, %v232_v34  ;;  %v136_v38 = vld [vmem:[#allocation5 + $0x60] sm:$0xff]  ;;  %v137_v39 = vld [vmem:[#allocation5 + $0x68] sm:$0xff]  ;;  %v138_v44 = vld [vmem:[#allocation5 + $0x70] sm:$0xff]  ;;  %p1810_p2 = pnand %p1809_p1, %p1803_p12 }
  0x63   :  { %1594 = vmatprep.subr.bf16.mxu1 %v1593_v17  ;;  %1417 = vmatprep.mubr.f32.mxu1 %v106_v29  ;;  %v234_v40 = vld [vmem:[#allocation7 + $0x60] sm:$0xff]  ;;  %v235_v41 = vld [vmem:[#allocation7 + $0x68] sm:$0xff]  ;;  %v1577_v42 = vpack.c.bf16 %v137_v39, %v136_v38  ;;  %v139_v45 = vld [vmem:[#allocation5 + $0x78] sm:$0xff] }
  0x64   :  { %v1609_v43 = vpack.c.bf16 %v235_v41, %v234_v40  ;;  %v236_v46 = vld [vmem:[#allocation7 + $0x70] sm:$0xff]  ;;  %v237_v47 = vld [vmem:[#allocation7 + $0x78] sm:$0xff]  ;;  %v1581_v48 = vpack.c.bf16 %v139_v45, %v138_v44  ;;  %v595_v50 = vld [vmem:[#allocation8] sm:$0xff] }
  0x65   :  { %1564 = vmatpush3.bf16.msra.mxu0 %v1561_v16  ;;  %v1613_v49 = vpack.c.bf16 %v237_v47, %v236_v46  ;;  %v596_v51 = vld [vmem:[#allocation8 + $0x8] sm:$0xff]  ;;  %v597_v53 = vld [vmem:[#allocation8 + $0x10] sm:$0xff]  ;;  %v598_v54 = vld [vmem:[#allocation8 + $0x18] sm:$0xff]  ;;  %v1839_v47 = vmov 1966171168  }
  0x66   :  { %1596 = vmatpush3.bf16.msra.mxu1 %v1593_v17  ;;  %1566 = vmatprep.subr.bf16.mxu0 %v1565_v22  ;;  %v1617_v52 = vpack.c.bf16 %v596_v51, %v595_v50  ;;  %v105_v55 = vld [vmem:[%s2119_s0 + $0x8] sm:$0xff]  ;;  %v1621_v57 = vpack.c.bf16 %v598_v54, %v597_v53  ;;  %v108_v58 = vld [vmem:[#allocation2 + $0x10] sm:$0xff]  ;;  %v599_v59 = vld [vmem:[#allocation8 + $0x20] sm:$0xff] }
  0x67   :  { %1598 = vmatprep.subr.bf16.mxu1 %v1597_v23  ;;  %v107_v56 = vld [vmem:[#allocation2 + $0x8] sm:$0xff]  ;;  %v109_v61 = vld [vmem:[#allocation2 + $0x18] sm:$0xff]  ;;  %v110_v63 = vld [vmem:[#allocation2 + $0x20] sm:$0xff] }
  0x68   :  { %v600_v60 = vld [vmem:[#allocation8 + $0x28] sm:$0xff]  ;;  %v601_v0 = vld [vmem:[#allocation8 + $0x30] sm:$0xff]  ;;  %v602_v1 = vld [vmem:[#allocation8 + $0x38] sm:$0xff] }
  0x69   :  { %1568 = vmatpush3.bf16.msra.mxu0 %v1565_v22  ;;  %v1625_v62 = vpack.c.bf16 %v600_v60, %v599_v59  ;;  %v111_v2 = vld [vmem:[#allocation2 + $0x28] sm:$0xff]  ;;  %v1629_v3 = vpack.c.bf16 %v602_v1, %v601_v0  ;;  %v112_v4 = vld [vmem:[#allocation2 + $0x30] sm:$0xff]  ;;  %v113_v5 = vld [vmem:[#allocation2 + $0x38] sm:$0xff] }
  0x6a   :  { %1600 = vmatpush3.bf16.msra.mxu1 %v1597_v23  ;;  %1570 = vmatprep.subr.bf16.mxu0 %v1569_v30  ;;  %v114_v6 = vld [vmem:[#allocation2 + $0x40] sm:$0xff]  ;;  %v115_v7 = vld [vmem:[#allocation2 + $0x48] sm:$0xff]  ;;  %v116_v8 = vld [vmem:[#allocation2 + $0x50] sm:$0xff] }
  0x6b   :  { %1602 = vmatprep.subr.bf16.mxu1 %v1601_v31  ;;  %v117_v9 = vld [vmem:[#allocation2 + $0x58] sm:$0xff]  ;;  %v118_v10 = vld [vmem:[#allocation2 + $0x60] sm:$0xff]  ;;  %v119_v11 = vld [vmem:[#allocation2 + $0x68] sm:$0xff] }
  0x6c   :  { %v120_v12 = vld [vmem:[#allocation2 + $0x70] sm:$0xff]  ;;  %v121_v13 = vld [vmem:[#allocation2 + $0x78] sm:$0xff]  ;;  %v603_v14 = vld [vmem:[#allocation8 + $0x40] sm:$0xff] }
  0x6d   :  { %1572 = vmatpush3.bf16.msra.mxu0 %v1569_v30  ;;  %v604_v15 = vld [vmem:[#allocation8 + $0x48] sm:$0xff]  ;;  %v605_v17 = vld [vmem:[#allocation8 + $0x50] sm:$0xff]  ;;  %v606_v18 = vld [vmem:[#allocation8 + $0x58] sm:$0xff] }
  0x6e   :  { %1604 = vmatpush3.bf16.msra.mxu1 %v1601_v31  ;;  %1574 = vmatprep.subr.bf16.mxu0 %v1573_v36  ;;  %v1633_v16 = vpack.c.bf16 %v604_v15, %v603_v14  ;;  %v1637_v19 = vpack.c.bf16 %v606_v18, %v605_v17  ;;  %v607_v20 = vld [vmem:[#allocation8 + $0x60] sm:$0xff]  ;;  %v608_v21 = vld [vmem:[#allocation8 + $0x68] sm:$0xff]  ;;  %v609_v23 = vld [vmem:[#allocation8 + $0x70] sm:$0xff] }
  0x6f   :  { %1606 = vmatprep.subr.bf16.mxu1 %v1605_v37  ;;  %v1641_v22 = vpack.c.bf16 %v608_v21, %v607_v20  ;;  %v610_v24 = vld [vmem:[#allocation8 + $0x78] sm:$0xff]  ;;  %v779_v26 = vld [vmem:[#allocation10] sm:$0xff]  ;;  %v780_v27 = vld [vmem:[#allocation10 + $0x8] sm:$0xff] }
  0x70   :  { %v1645_v25 = vpack.c.bf16 %v610_v24, %v609_v23  ;;  %v781_v28 = vld [vmem:[#allocation10 + $0x10] sm:$0xff]  ;;  %v1649_v29 = vpack.c.bf16 %v780_v27, %v779_v26  ;;  %v782_v30 = vld [vmem:[#allocation10 + $0x18] sm:$0xff]  ;;  %v783_v32 = vld [vmem:[#allocation10 + $0x20] sm:$0xff] }
  0x71   :  { %1576 = vmatpush3.bf16.msra.mxu0 %v1573_v36  ;;  %v1653_v31 = vpack.c.bf16 %v782_v30, %v781_v28  ;;  %v784_v33 = vld [vmem:[#allocation10 + $0x28] sm:$0xff]  ;;  %v785_v35 = vld [vmem:[#allocation10 + $0x30] sm:$0xff]  ;;  %v786_v36 = vld [vmem:[#allocation10 + $0x38] sm:$0xff] }
  0x72   :  { %1608 = vmatpush3.bf16.msra.mxu1 %v1605_v37  ;;  %1578 = vmatprep.subr.bf16.mxu0 %v1577_v42  ;;  %v1657_v34 = vpack.c.bf16 %v784_v33, %v783_v32  ;;  %v1661_v37 = vpack.c.bf16 %v786_v36, %v785_v35  ;;  %v787_v38 = vld [vmem:[#allocation10 + $0x40] sm:$0xff]  ;;  %v788_v39 = vld [vmem:[#allocation10 + $0x48] sm:$0xff]  ;;  %v789_v41 = vld [vmem:[#allocation10 + $0x50] sm:$0xff] }
  0x73   :  { %1610 = vmatprep.subr.bf16.mxu1 %v1609_v43  ;;  %v1665_v40 = vpack.c.bf16 %v788_v39, %v787_v38  ;;  %v791_v44 = vld [vmem:[#allocation10 + $0x60] sm:$0xff]  ;;  %v792_v45 = vld [vmem:[#allocation10 + $0x68] sm:$0xff] }
  0x74   :  { %v1673_v46 = vpack.c.bf16 %v792_v45, %v791_v44 }
  0x75   :  { %1580 = vmatpush3.bf16.msra.mxu0 %v1577_v42  ;;  %v790_v42 = vld [vmem:[#allocation10 + $0x58] sm:$0xff] }
  0x76   :  { %1612 = vmatpush3.bf16.msra.mxu1 %v1609_v43  ;;  %1582 = vmatprep.subr.bf16.mxu0 %v1581_v48  ;;  %v1669_v43 = vpack.c.bf16 %v790_v42, %v789_v41 }
  0x77   :  { %1614 = vmatprep.subr.bf16.mxu1 %v1613_v49 }
  0x79   :  { %1584 = vmatpush3.bf16.msra.mxu0 %v1581_v48  ;;  %v387_v48 = vunpack.c.l.s4 %v1839_v47 }
  0x7a   :  { %1616 = vmatpush3.bf16.msra.mxu1 %v1613_v49  ;;  %1618 = vmatprep.subr.bf16.mxu0 %v1617_v52  ;;  %v389_v49 = vlaneseq }
  0x7b   :  { %1650 = vmatprep.subr.bf16.mxu1 %v1649_v29  ;;  %v388_v50 = vunpack.c.0.s8 %v387_v48 }
  0x7c   :  { %1383 = vmatmul.mubr.f32.vlgmr.msra.gmra.mrb[0].mxu0 %v105_v55  ;;  %v1991_v51 = vshrl.u32 %v389_v49, 7 }
  0x7d   :  { %1418 = vmatmul.mubr.f32.vlgmr.msra.gmra.mrb[0].mxu1 %v107_v56  ;;  %1620 = vmatpush3.bf16.msra.mxu0 %v1617_v52  ;;  %v1233_v52 = vld [vmem:[%s2124_s5] ss:$0 sm:$0xff] }
  0x7e   :  { %1420 = vmatprep.mubr.f32.mxu1 %v108_v58  ;;  %1622 = vmatprep.subr.bf16.mxu0 %v1621_v57  ;;  %v1997_v53 = vsub.s32 %v388_v50, %v1991_v51 }
  0x7f   :  { %1652 = vmatpush3.bf16.msra.mxu1 %v1649_v29 }
  0x80   :  { %1654 = vmatprep.subr.bf16.mxu1 %v1653_v31 }
  0x81   :  { %1421 = vmatmul.mubr.f32.gmra.mrb[2].mxu1 %v109_v61  ;;  %1624 = vmatpush3.bf16.msra.mxu0 %v1621_v57 }
  0x82   :  { %1423 = vmatprep.mubr.f32.mxu1 %v110_v63  ;;  %1626 = vmatprep.subr.bf16.mxu0 %v1625_v62  ;;  %v2002_v63 = vsub.s32 0, %v1991_v51 }
  0x83   :  { %1656 = vmatpush3.bf16.msra.mxu1 %v1653_v31 }
  0x84   :  { %1658 = vmatprep.subr.bf16.mxu1 %v1657_v34 }
  0x85   :  { %1424 = vmatmul.mubr.f32.gmra.mrb[4].mxu1 %v111_v2  ;;  %1628 = vmatpush3.bf16.msra.mxu0 %v1625_v62 }
  0x86   :  { %1426 = vmatprep.mubr.f32.mxu1 %v112_v4  ;;  %1630 = vmatprep.subr.bf16.mxu0 %v1629_v3 }
  0x87   :  { %1660 = vmatpush3.bf16.msra.mxu1 %v1657_v34 }
  0x88   :  { %1662 = vmatprep.subr.bf16.mxu1 %v1661_v37 }
  0x89   :  { %1427 = vmatmul.mubr.f32.gmra.mrb[6].mxu1 %v113_v5  ;;  %1632 = vmatpush3.bf16.msra.mxu0 %v1629_v3 }
  0x8a   :  { %1429 = vmatprep.mubr.f32.mxu1 %v114_v6  ;;  %1634 = vmatprep.subr.bf16.mxu0 %v1633_v16 }
  0x8b   :  { %1664 = vmatpush3.bf16.msra.mxu1 %v1661_v37 }
  0x8c   :  { %1666 = vmatprep.subr.bf16.mxu1 %v1665_v40 }
  0x8d   :  { %1430 = vmatmul.mubr.f32.gmra.mrb[8].mxu1 %v115_v7  ;;  %1636 = vmatpush3.bf16.msra.mxu0 %v1633_v16 }
  0x8e   :  { %1432 = vmatprep.mubr.f32.mxu1 %v116_v8  ;;  %1638 = vmatprep.subr.bf16.mxu0 %v1637_v19 }
  0x8f   :  { %1668 = vmatpush3.bf16.msra.mxu1 %v1665_v40 }
  0x90   :  { %1670 = vmatprep.subr.bf16.mxu1 %v1669_v43 }
  0x91   :  { %1433 = vmatmul.mubr.f32.gmra.mrb[10].mxu1 %v117_v9  ;;  %1640 = vmatpush3.bf16.msra.mxu0 %v1637_v19 }
  0x92   :  { %1435 = vmatprep.mubr.f32.mxu1 %v118_v10  ;;  %1642 = vmatprep.subr.bf16.mxu0 %v1641_v22 }
  0x93   :  { %1672 = vmatpush3.bf16.msra.mxu1 %v1669_v43 }
  0x94   :  { %1674 = vmatprep.subr.bf16.mxu1 %v1673_v46 }
  0x95   :  { %1436 = vmatmul.mubr.f32.gmra.mrb[12].mxu1 %v119_v11  ;;  %1644 = vmatpush3.bf16.msra.mxu0 %v1641_v22 }
  0x96   :  { %1438 = vmatprep.mubr.f32.mxu1 %v120_v12  ;;  %1646 = vmatprep.subr.bf16.mxu0 %v1645_v25 }
  0x97   :  { %1676 = vmatpush3.bf16.msra.mxu1 %v1673_v46 }
  0x99   :  { %1439 = vmatmul.mubr.f32.gmra.mrb[14].mxu1 %v121_v13  ;;  %1648 = vmatpush3.bf16.msra.mxu0 %v1645_v25 }
 0x14f   :  { %v1384_v54 = vpop.f32.mrb[0].mxu0 }
 0x150   :  { %v219_v55 = vadd.f32 %v1384_v54, %v1233_v52  ;;  %v213_v56 = vpop.f32.mrb[1].mxu0  ;;  %v1419_v57 = vpop.f32.mrb[0].mxu1 }
 0x151   :  { %v214_v58 = vadd.f32 %v1233_v52, %v213_v56  ;;  %v304_v59 = vpop.f32.mrb[1].mxu1 }
 0x152   :  { %v441_v60 = vrot.slane %v219_v55, %v1997_v53  ;;  %v434_v0 = vcombine.high %v219_v55, %v219_v55 }
 0x153   :  { %v385_v61 = vcombine.high %v214_v58, %v214_v58  ;;  %v392_v62 = vrot.slane %v214_v58, %v1997_v53 }
 0x154   :  { %v1422_v1 = vpop.f32.mrb[2].mxu1  ;;  %v449_v6 = vcombine.high %v441_v60, %v441_v60  ;;  %v448_v11 = vrot.slane %v434_v0, %v1997_v53  ;;  %v457_v14 = vrot.slane %v441_v60, %v1997_v53 }
 0x155   :  { %v399_v2 = vrot.slane %v385_v61, %v1997_v53  ;;  %v400_v3 = vcombine.high %v392_v62, %v392_v62  ;;  %v408_v4 = vrot.slane %v392_v62, %v1997_v53  ;;  %v314_v5 = vpop.f32.mrb[3].mxu1 }
 0x156   :  { %v471_v23 = vrot.slane %v449_v6, %v1997_v53  ;;  %v450_v42 = vcombine.high %v448_v11, %v448_v11  ;;  %v518_v45 = vrot.slane %v457_v14, %v2002_v63  ;;  %v479_v46 = vcombine.high %v457_v14, %v457_v14 }
 0x157   :  { %v422_v7 = vrot.slane %v400_v3, %v1997_v53  ;;  %v486_v8 = vrot.slane %v408_v4, %v2002_v63  ;;  %v430_v9 = vcombine.high %v408_v4, %v408_v4  ;;  %v401_v10 = vcombine.high %v399_v2, %v399_v2 }
 0x158   :  { %v1425_v12 = vpop.f32.mrb[4].mxu1  ;;  %v415_v13 = vrot.slane %v399_v2, %v1997_v53  ;;  %v522_v40 = vrot.slane %v471_v23, %v2002_v63  ;;  %v481_v41 = vcombine.high %v471_v23, %v471_v23  ;;  %v478_v55 = vrot.slane %v450_v42, %v1997_v53  ;;  %v793_v23 = vld [vmem:[#allocation10 + $0x70] sm:$0xff] }
 0x159   :  { %v490_v15 = vrot.slane %v422_v7, %v2002_v63  ;;  %v563_v16 = vadd.f32 %v486_v8, %v304_v59  ;;  %v432_v17 = vcombine.high %v422_v7, %v422_v7  ;;  %v494_v18 = vrot.slane %v430_v9, %v2002_v63  ;;  %v324_v19 = vpop.f32.mrb[5].mxu1 }
 0x15a   :  { %v429_v20 = vrot.slane %v401_v10, %v1997_v53  ;;  %v502_v21 = vrot.slane %v415_v13, %v2002_v63  ;;  %v431_v22 = vcombine.high %v415_v13, %v415_v13  ;;  %v530_v54 = vrot.slane %v481_v41, %v2002_v63 }
 0x15b   :  { %v564_v24 = vadd.f32 %v1419_v57, %v490_v15  ;;  %v579_v25 = vmax.f32 %v563_v16, 0.0  ;;  %v498_v26 = vrot.slane %v432_v17, %v2002_v63  ;;  %v565_v27 = vadd.f32 %v494_v18, %v314_v5 }
 0x15c   :  { %v506_v28 = vrot.slane %v429_v20, %v2002_v63  ;;  %v567_v29 = vadd.f32 %v502_v21, %v324_v19  ;;  %v1428_v30 = vpop.f32.mrb[6].mxu1  ;;  %v433_v31 = vcombine.high %v429_v20, %v429_v20  ;;  %v510_v32 = vrot.slane %v431_v22, %v2002_v63 }
 0x15d   :  { %v580_v33 = vmax.f32 %v564_v24, 0.0  ;;  %v566_v34 = vadd.f32 %v1422_v1, %v498_v26  ;;  %v581_v35 = vmax.f32 %v565_v27, 0.0  ;;  %v334_v36 = vpop.f32.mrb[7].mxu1  ;;  %1473 = vmatprep.mubr.f32.mxu0 %v579_v25  ;;  %v526_v57 = vrot.slane %v479_v46, %v2002_v63  ;;  %v794_v24 = vld [vmem:[#allocation10 + $0x78] sm:$0xff]  ;;  %v122_v26 = vld [vmem:[%s2121_s2] sm:$0xff] }
 0x15e   :  { %v568_v37 = vadd.f32 %v1425_v12, %v506_v28  ;;  %v514_v38 = vrot.slane %v433_v31, %v2002_v63  ;;  %v569_v39 = vadd.f32 %v510_v32, %v334_v36  ;;  %v583_v50 = vmax.f32 %v567_v29, 0.0  ;;  %v123_v28 = vld [vmem:[%s2121_s2 + $0x8] sm:$0xff] }
 0x15f   :  { %1474 = vmatmul.mubr.f32.vlgmr.msra.gmra.mrb[2].mxu0 %v580_v33  ;;  %v582_v47 = vmax.f32 %v566_v34, 0.0  ;;  %v464_v58 = vrot.slane %v448_v11, %v1997_v53  ;;  %v538_v1 = vrot.slane %v478_v55, %v2002_v63  ;;  %v482_v2 = vcombine.high %v478_v55, %v478_v55 }
 0x160   :  { %v570_v43 = vadd.f32 %v1428_v30, %v514_v38  ;;  %v1431_v44 = vpop.f32.mrb[8].mxu1  ;;  %1476 = vmatprep.mubr.f32.mxu0 %v581_v35  ;;  %v584_v59 = vmax.f32 %v568_v37, 0.0  ;;  %v585_v62 = vmax.f32 %v569_v39, 0.0  ;;  %v1677_v25 = vpack.c.bf16 %v794_v24, %v793_v23 }
 0x161   :  { %v572_v48 = vadd.f32 %v1431_v44, %v522_v40  ;;  %v344_v49 = vpop.f32.mrb[9].mxu1  ;;  %v534_v4 = vrot.slane %v464_v58, %v2002_v63  ;;  %v480_v5 = vcombine.high %v464_v58, %v464_v58  ;;  %v546_v53 = vrot.slane %v482_v2, %v2002_v63 }
 0x162   :  { %v571_v52 = vadd.f32 %v518_v45, %v344_v49  ;;  %v586_v6 = vmax.f32 %v570_v43, 0.0  ;;  %1678 = vmatprep.subr.bf16.mxu1 %v1677_v25  ;;  %v956_v27 = vsub.s32 1, %v1991_v51  ;;  %v950_v29 = vrot.slane %v122_v26, %v2002_v63 }
 0x163   :  { %1477 = vmatmul.mubr.f32.gmra.mrb[4].mxu0 %v582_v47  ;;  %v542_v12 = vrot.slane %v480_v5, %v2002_v63  ;;  %v588_v13 = vmax.f32 %v572_v48, 0.0  ;;  %1680 = vmatpush3.bf16.msra.mxu1 %v1677_v25  ;;  %v1006_v30 = vrot.slane %v123_v28, %v2002_v63  ;;  %v963_v32 = vsub.s32 2, %v1991_v51 }
 0x164   :  { %v1434_v56 = vpop.f32.mrb[10].mxu1  ;;  %1479 = vmatprep.mubr.f32.mxu0 %v583_v50  ;;  %v587_v9 = vmax.f32 %v571_v52, 0.0  ;;  %952 = vbcast.lane.b32.xlu0 %v950_v29, 256  ;;  %v957_v31 = vrot.slane %v122_v26, %v956_v27  ;;  %v1013_v33 = vrot.slane %v123_v28, %v956_v27  ;;  %v970_v35 = vsub.s32 3, %v1991_v51  ;;  %v1234_v50 = vld [vmem:[%s2126_s7] ss:$0 sm:$0xff] }
 0x165   :  { %v574_v60 = vadd.f32 %v1434_v56, %v530_v54  ;;  %v354_v61 = vpop.f32.mrb[11].mxu1  ;;  %1008 = vbcast.lane.b32.xlu1 %v1006_v30, 256  ;;  %v964_v34 = vrot.slane %v122_v26, %v963_v32  ;;  %v1020_v36 = vrot.slane %v123_v28, %v963_v32  ;;  %v977_v38 = vsub.s32 4, %v1991_v51 }
 0x166   :  { %v573_v0 = vadd.f32 %v526_v57, %v354_v61  ;;  %v971_v37 = vrot.slane %v122_v26, %v970_v35  ;;  %v1027_v39 = vrot.slane %v123_v28, %v970_v35  ;;  %v984_v40 = vsub.s32 5, %v1991_v51 }
 0x167   :  { %1480 = vmatmul.mubr.f32.gmra.mrb[6].mxu0 %v584_v59  ;;  %v590_v18 = vmax.f32 %v574_v60, 0.0  ;;  %v978_v63 = vrot.slane %v122_v26, %v977_v38  ;;  %v1034_v41 = vrot.slane %v123_v28, %v977_v38  ;;  %v991_v43 = vsub.s32 6, %v1991_v51 }
 0x168   :  { %v1437_v3 = vpop.f32.mrb[12].mxu1  ;;  %1482 = vmatprep.mubr.f32.mxu0 %v585_v62  ;;  %v589_v16 = vmax.f32 %v573_v0, 0.0  ;;  %959 = vbcast.lane.b32.xlu0 %v957_v31, 256  ;;  %v985_v42 = vrot.slane %v122_v26, %v984_v40  ;;  %v1041_v44 = vrot.slane %v123_v28, %v984_v40  ;;  %v998_v46 = vsub.s32 7, %v1991_v51 }
 0x169   :  { %v576_v7 = vadd.f32 %v1437_v3, %v538_v1  ;;  %v364_v8 = vpop.f32.mrb[13].mxu1  ;;  %1015 = vbcast.lane.b32.xlu1 %v1013_v33, 256  ;;  %v992_v45 = vrot.slane %v122_v26, %v991_v43  ;;  %v1048_v47 = vrot.slane %v123_v28, %v991_v43 }
 0x16a   :  { %v575_v10 = vadd.f32 %v534_v4, %v364_v8  ;;  %v999_v48 = vrot.slane %v122_v26, %v998_v46  ;;  %v1055_v49 = vrot.slane %v123_v28, %v998_v46 }
 0x16b   :  { %1483 = vmatmul.mubr.f32.gmra.mrb[8].mxu0 %v586_v6  ;;  %v592_v20 = vmax.f32 %v576_v7, 0.0 }
 0x16c   :  { %v1440_v11 = vpop.f32.mrb[14].mxu1  ;;  %1485 = vmatprep.mubr.f32.mxu0 %v587_v9  ;;  %v591_v19 = vmax.f32 %v575_v10, 0.0  ;;  %966 = vbcast.lane.b32.xlu0 %v964_v34, 256 }
 0x16d   :  { %v578_v14 = vadd.f32 %v1440_v11, %v546_v53  ;;  %v374_v15 = vpop.f32.mrb[15].mxu1  ;;  %1022 = vbcast.lane.b32.xlu1 %v1020_v36, 256 }
 0x16e   :  { %v577_v17 = vadd.f32 %v542_v12, %v374_v15 }
 0x16f   :  { %1486 = vmatmul.mubr.f32.gmra.mrb[10].mxu0 %v588_v13  ;;  %v594_v22 = vmax.f32 %v578_v14, 0.0 }
 0x170   :  { %1488 = vmatprep.mubr.f32.mxu0 %v589_v16  ;;  %v593_v21 = vmax.f32 %v577_v17, 0.0  ;;  %973 = vbcast.lane.b32.xlu0 %v971_v37, 256 }
 0x171   :  { %1029 = vbcast.lane.b32.xlu1 %v1027_v39, 256 }
 0x173   :  { %1489 = vmatmul.mubr.f32.gmra.mrb[12].mxu0 %v590_v18 }
 0x174   :  { %1491 = vmatprep.mubr.f32.mxu0 %v591_v19  ;;  %980 = vbcast.lane.b32.xlu0 %v978_v63, 256 }
 0x175   :  { %1036 = vbcast.lane.b32.xlu1 %v1034_v41, 256 }
 0x177   :  { %1492 = vmatmul.mubr.f32.gmra.mrb[14].mxu0 %v592_v20 }
 0x178   :  { %1494 = vmatprep.mubr.f32.mxu0 %v593_v21  ;;  %987 = vbcast.lane.b32.xlu0 %v985_v42, 256  ;;  %v2055_v42 = vld [vmem:[%s2128_s9] ss:$0 sm:$0xff] }
 0x179   :  { %1043 = vbcast.lane.b32.xlu1 %v1041_v44, 256 }
 0x17b   :  { %1495 = vmatmul.mubr.f32.gmra.mrb[16].mxu0 %v594_v22 }
 0x17c   :  { %994 = vbcast.lane.b32.xlu0 %v992_v45, 256 }
 0x17d   :  { %1050 = vbcast.lane.b32.xlu1 %v1048_v47, 256 }
 0x180   :  { %1001 = vbcast.lane.b32.xlu0 %v999_v48, 256 }
 0x181   :  { %1057 = vbcast.lane.b32.xlu1 %v1055_v49, 256 }
 0x1d6   :  { %v953_v36 = vpop.permute.xlu0 %952 }
 0x1d7   :  { %v2048_v39 = vpop.permute.xlu1 %1008 }
 0x1da   :  { %v960_v37 = vpop.permute.xlu0 %959 }
 0x1db   :  { %v2050_v40 = vpop.permute.xlu1 %1015 }
 0x1de   :  { %v967_v38 = vpop.permute.xlu0 %966 }
 0x1df   :  { %v2057_v43 = vpop.permute.xlu1 %1022 }
 0x1e2   :  { %v974_v63 = vpop.permute.xlu0 %973 }
 0x1e6   :  { %v981_v41 = vpop.permute.xlu0 %980 }
 0x1ea   :  { %v988_v45 = vpop.permute.xlu0 %987 }
 0x232   :  { %v1475_v52 = vpop.f32.mrb[2].mxu0 }
 0x233   :  { %v690_v54 = vadd.f32 %v1475_v52, %v1234_v50  ;;  %v684_v55 = vpop.f32.mrb[3].mxu0 }
 0x234   :  { %v685_v56 = vadd.f32 %v1234_v50, %v684_v55 }
 0x235   :  { %v764_v59 = vmax.f32 %v690_v54, 0.0  ;;  %v2061_v54 = vpop.permute.xlu1 %1029 }
 0x236   :  { %v763_v57 = vmax.f32 %v685_v56, 0.0  ;;  %v1478_v58 = vpop.f32.mrb[4].mxu0 }
 0x237   :  { %v700_v51 = vadd.f32 %v1478_v58, %v1234_v50  ;;  %v694_v60 = vpop.f32.mrb[5].mxu0 }
 0x238   :  { %v695_v61 = vadd.f32 %v1234_v50, %v694_v60  ;;  %1529 = vmatprep.mubr.f32.mxu1 %v763_v57 }
 0x239   :  { %1530 = vmatmul.mubr.f32.vlgmr.msra.gmra.mrb[16].mxu1 %v764_v59  ;;  %v766_v1 = vmax.f32 %v700_v51, 0.0  ;;  %v995_v51 = vpop.permute.xlu0 %994 }
 0x23a   :  { %v765_v62 = vmax.f32 %v695_v61, 0.0  ;;  %v1481_v0 = vpop.f32.mrb[6].mxu0 }
 0x23b   :  { %v710_v2 = vadd.f32 %v1481_v0, %v1234_v50  ;;  %v704_v3 = vpop.f32.mrb[7].mxu0 }
 0x23c   :  { %v705_v4 = vadd.f32 %v1234_v50, %v704_v3  ;;  %1532 = vmatprep.mubr.f32.mxu1 %v765_v62 }
 0x23d   :  { %1533 = vmatmul.mubr.f32.gmra.mrb[18].mxu1 %v766_v1  ;;  %v768_v7 = vmax.f32 %v710_v2, 0.0 }
 0x23e   :  { %v767_v5 = vmax.f32 %v705_v4, 0.0  ;;  %v1484_v6 = vpop.f32.mrb[8].mxu0 }
 0x23f   :  { %v720_v8 = vadd.f32 %v1484_v6, %v1234_v50  ;;  %v714_v9 = vpop.f32.mrb[9].mxu0 }
 0x240   :  { %v715_v10 = vadd.f32 %v1234_v50, %v714_v9  ;;  %1535 = vmatprep.mubr.f32.mxu1 %v767_v5  ;;  %v2067_v9 = vpop.permute.xlu1 %1036 }
 0x241   :  { %1536 = vmatmul.mubr.f32.gmra.mrb[20].mxu1 %v768_v7  ;;  %v770_v12 = vmax.f32 %v720_v8, 0.0 }
 0x242   :  { %v769_v53 = vmax.f32 %v715_v10, 0.0  ;;  %v1487_v11 = vpop.f32.mrb[10].mxu0 }
 0x243   :  { %v730_v13 = vadd.f32 %v1487_v11, %v1234_v50  ;;  %v724_v14 = vpop.f32.mrb[11].mxu0 }
 0x244   :  { %v725_v15 = vadd.f32 %v1234_v50, %v724_v14  ;;  %1538 = vmatprep.mubr.f32.mxu1 %v769_v53 }
 0x245   :  { %1539 = vmatmul.mubr.f32.gmra.mrb[22].mxu1 %v770_v12  ;;  %v772_v18 = vmax.f32 %v730_v13, 0.0 }
 0x246   :  { %v771_v16 = vmax.f32 %v725_v15, 0.0  ;;  %v1490_v17 = vpop.f32.mrb[12].mxu0 }
 0x247   :  { %v740_v19 = vadd.f32 %v1490_v17, %v1234_v50  ;;  %v734_v20 = vpop.f32.mrb[13].mxu0 }
 0x248   :  { %v735_v21 = vadd.f32 %v1234_v50, %v734_v20  ;;  %1541 = vmatprep.mubr.f32.mxu1 %v771_v16  ;;  %v1002_v16 = vpop.permute.xlu0 %1001 }
 0x249   :  { %1542 = vmatmul.mubr.f32.gmra.mrb[24].mxu1 %v772_v18  ;;  %v774_v24 = vmax.f32 %v740_v19, 0.0 }
 0x24a   :  { %v773_v22 = vmax.f32 %v735_v21, 0.0  ;;  %v1493_v23 = vpop.f32.mrb[14].mxu0 }
 0x24b   :  { %v750_v25 = vadd.f32 %v1493_v23, %v1234_v50  ;;  %v744_v26 = vpop.f32.mrb[15].mxu0 }
 0x24c   :  { %v745_v27 = vadd.f32 %v1234_v50, %v744_v26  ;;  %1544 = vmatprep.mubr.f32.mxu1 %v773_v22 }
 0x24d   :  { %1545 = vmatmul.mubr.f32.gmra.mrb[26].mxu1 %v774_v24  ;;  %v776_v30 = vmax.f32 %v750_v25, 0.0 }
 0x24e   :  { %v775_v28 = vmax.f32 %v745_v27, 0.0  ;;  %v1496_v29 = vpop.f32.mrb[16].mxu0 }
 0x24f   :  { %v760_v31 = vadd.f32 %v1496_v29, %v1234_v50  ;;  %v754_v32 = vpop.f32.mrb[17].mxu0 }
 0x250   :  { %v755_v33 = vadd.f32 %v1234_v50, %v754_v32  ;;  %1547 = vmatprep.mubr.f32.mxu1 %v775_v28 }
 0x251   :  { %1548 = vmatmul.mubr.f32.gmra.mrb[28].mxu1 %v776_v30  ;;  %v778_v35 = vmax.f32 %v760_v31, 0.0 }
 0x252   :  { %v777_v34 = vmax.f32 %v755_v33, 0.0 }
 0x254   :  { %1550 = vmatprep.mubr.f32.mxu1 %v777_v34 }
 0x255   :  { %1551 = vmatmul.mubr.f32.gmra.mrb[30].mxu1 %v778_v35  ;;  %v1044_v35 = vpop.permute.xlu1 %1043 }
 0x30c   :  { %v1531_v44 = vpop.f32.mrb[16].mxu1 }
 0x30d   :  { %v874_v46 = vadd.f32 %v1531_v44, %v2055_v42  ;;  %v868_v47 = vpop.f32.mrb[17].mxu1 }
 0x30e   :  { %v869_v48 = vadd.f32 %v2055_v42, %v868_v47 }
 0x30f   :  { %v1060_v49 = vmul.f32 %v960_v37, %v874_v46 }
 0x310   :  { %v1059_v50 = vmul.f32 %v953_v36, %v869_v48  ;;  %v1534_v52 = vpop.f32.mrb[18].mxu1 }
 0x311   :  { %v1081_v55 = vrot.slane %v1060_v49, 4  ;;  %v884_v56 = vadd.f32 %v1534_v52, %v2055_v42  ;;  %v878_v57 = vpop.f32.mrb[19].mxu1 }
 0x312   :  { %v1075_v58 = vrot.slane %v1059_v50, 4  ;;  %v879_v59 = vadd.f32 %v2055_v42, %v878_v57 }
 0x313   :  { %v1082_v60 = vadd.f32 %v1081_v55, %v1060_v49  ;;  %v1062_v61 = vmul.f32 %v974_v63, %v884_v56 }
 0x314   :  { %v1076_v62 = vadd.f32 %v1075_v58, %v1059_v50  ;;  %v1061_v0 = vmul.f32 %v967_v38, %v879_v59  ;;  %v1537_v1 = vpop.f32.mrb[20].mxu1 }
 0x315   :  { %v1083_v2 = vrot.slane %v1082_v60, 2  ;;  %v1093_v3 = vrot.slane %v1062_v61, 4  ;;  %v894_v4 = vadd.f32 %v1537_v1, %v2055_v42  ;;  %v888_v5 = vpop.f32.mrb[21].mxu1 }
 0x316   :  { %v1077_v6 = vrot.slane %v1076_v62, 2  ;;  %v1087_v7 = vrot.slane %v1061_v0, 4  ;;  %v889_v8 = vadd.f32 %v2055_v42, %v888_v5  ;;  %v1051_v5 = vpop.permute.xlu1 %1050 }
 0x317   :  { %v1084_v10 = vadd.f32 %v1083_v2, %v1082_v60  ;;  %v1094_v53 = vadd.f32 %v1093_v3, %v1062_v61  ;;  %v1064_v11 = vmul.f32 %v988_v45, %v894_v4 }
 0x318   :  { %v1078_v12 = vadd.f32 %v1077_v6, %v1076_v62  ;;  %v1088_v13 = vadd.f32 %v1087_v7, %v1061_v0  ;;  %v1063_v14 = vmul.f32 %v981_v41, %v889_v8  ;;  %v1540_v15 = vpop.f32.mrb[22].mxu1 }
 0x319   :  { %v1085_v17 = vrot.slane %v1084_v10, 1  ;;  %v1095_v18 = vrot.slane %v1094_v53, 2  ;;  %v1105_v19 = vrot.slane %v1064_v11, 4  ;;  %v904_v20 = vadd.f32 %v1540_v15, %v2055_v42  ;;  %v898_v21 = vpop.f32.mrb[23].mxu1 }
 0x31a   :  { %v1079_v22 = vrot.slane %v1078_v12, 1  ;;  %v1089_v23 = vrot.slane %v1088_v13, 2  ;;  %v1099_v24 = vrot.slane %v1063_v14, 4  ;;  %v899_v25 = vadd.f32 %v2055_v42, %v898_v21 }
 0x31b   :  { %v1086_v26 = vadd.f32 %v1085_v17, %v1084_v10  ;;  %v1096_v27 = vadd.f32 %v1095_v18, %v1094_v53  ;;  %v1106_v28 = vadd.f32 %v1105_v19, %v1064_v11  ;;  %v1066_v29 = vmul.f32 %v1002_v16, %v904_v20 }
 0x31c   :  { %v1080_v30 = vadd.f32 %v1079_v22, %v1078_v12  ;;  %v1090_v31 = vadd.f32 %v1089_v23, %v1088_v13  ;;  %v1100_v32 = vadd.f32 %v1099_v24, %v1063_v14  ;;  %v1065_v33 = vmul.f32 %v995_v51, %v899_v25  ;;  %v1543_v34 = vpop.f32.mrb[24].mxu1 }
 0x31d   :  { %v1097_v36 = vrot.slane %v1096_v27, 1  ;;  %v1107_v37 = vrot.slane %v1106_v28, 2  ;;  %v1117_v38 = vrot.slane %v1066_v29, 4  ;;  %v914_v63 = vadd.f32 %v1543_v34, %v2055_v42  ;;  %v908_v41 = vpop.f32.mrb[25].mxu1 }
 0x31e   :  { %v1188_v44 = vsel %vm1187_vm0, %v1086_v26, %v1080_v30  ;;  %v1091_v45 = vrot.slane %v1090_v31, 1  ;;  %v1101_v46 = vrot.slane %v1100_v32, 2  ;;  %v1111_v47 = vrot.slane %v1065_v33, 4 }
 0x31f   :  { %v1098_v48 = vadd.f32 %v1097_v36, %v1096_v27  ;;  %v1108_v49 = vadd.f32 %v1107_v37, %v1106_v28  ;;  %v1118_v50 = vadd.f32 %v1117_v38, %v1066_v29  ;;  %v1068_v52 = vmul.f32 %v2050_v40, %v914_v63  ;;  %v1058_v29 = vpop.permute.xlu1 %1057 }
 0x320   :  { %v1092_v55 = vadd.f32 %v1091_v45, %v1090_v31  ;;  %v1102_v56 = vadd.f32 %v1101_v46, %v1100_v32  ;;  %v1112_v57 = vadd.f32 %v1111_v47, %v1065_v33  ;;  %v909_v58 = vadd.f32 %v2055_v42, %v908_v41  ;;  %v1546_v59 = vpop.f32.mrb[26].mxu1 }
 0x321   :  { %v1109_v51 = vrot.slane %v1108_v49, 1  ;;  %v1119_v60 = vrot.slane %v1118_v50, 2  ;;  %v1129_v61 = vrot.slane %v1068_v52, 4  ;;  %v924_v62 = vadd.f32 %v1546_v59, %v2055_v42  ;;  %v918_v0 = vpop.f32.mrb[27].mxu1 }
 0x322   :  { %v1190_v1 = vsel %vm1189_vm1, %v1092_v55, %v1188_v44  ;;  %v1103_v2 = vrot.slane %v1102_v56, 1  ;;  %v1113_v3 = vrot.slane %v1112_v57, 2  ;;  %v1067_v4 = vmul.f32 %v2048_v39, %v909_v58 }
 0x323   :  { %v1192_v40 = vsel %vm1191_vm2, %v1098_v48, %v1190_v1  ;;  %v1120_v6 = vadd.f32 %v1119_v60, %v1118_v50  ;;  %v1130_v7 = vadd.f32 %v1129_v61, %v1068_v52  ;;  %v1070_v11 = vmul.f32 %v2061_v54, %v924_v62 }
 0x324   :  { %v1104_v8 = vadd.f32 %v1103_v2, %v1102_v56  ;;  %v1114_v10 = vadd.f32 %v1113_v3, %v1112_v57  ;;  %v1123_v53 = vrot.slane %v1067_v4, 4  ;;  %v1549_v12 = vpop.f32.mrb[28].mxu1  ;;  %v1110_v13 = vadd.f32 %v1109_v51, %v1108_v49 }
 0x325   :  { %v1131_v14 = vrot.slane %v1130_v7, 2  ;;  %v919_v15 = vadd.f32 %v2055_v42, %v918_v0  ;;  %v934_v16 = vadd.f32 %v1549_v12, %v2055_v42  ;;  %v928_v39 = vpop.f32.mrb[29].mxu1  ;;  %v1141_v20 = vrot.slane %v1070_v11, 4 }
 0x326   :  { %v1194_v17 = vsel %vm1193_vm3, %v1104_v8, %v1192_v40  ;;  %v1115_v18 = vrot.slane %v1114_v10, 1  ;;  %v1124_v19 = vadd.f32 %v1123_v53, %v1067_v4  ;;  %v1121_v21 = vrot.slane %v1120_v6, 1 }
 0x327   :  { %v1132_v22 = vadd.f32 %v1131_v14, %v1130_v7  ;;  %v1069_v23 = vmul.f32 %v2057_v43, %v919_v15  ;;  %v1072_v54 = vmul.f32 %v1044_v35, %v934_v16  ;;  %v1142_v26 = vadd.f32 %v1141_v20, %v1070_v11 }
 0x328   :  { %v1116_v24 = vadd.f32 %v1115_v18, %v1114_v10  ;;  %v1125_v25 = vrot.slane %v1124_v19, 2  ;;  %v929_v27 = vadd.f32 %v2055_v42, %v928_v39  ;;  %v1552_v28 = vpop.f32.mrb[30].mxu1  ;;  %v1196_v55 = vsel %vm1195_vm4, %v1110_v13, %v1194_v17 }
 0x329   :  { %v1133_v30 = vrot.slane %v1132_v22, 1  ;;  %v1135_v31 = vrot.slane %v1069_v23, 4  ;;  %v1153_v32 = vrot.slane %v1072_v54, 4  ;;  %v944_v33 = vadd.f32 %v1552_v28, %v2055_v42  ;;  %v938_v34 = vpop.f32.mrb[31].mxu1 }
 0x32a   :  { %v1126_v36 = vadd.f32 %v1125_v25, %v1124_v19  ;;  %v1143_v37 = vrot.slane %v1142_v26, 2  ;;  %v1071_v38 = vmul.f32 %v2067_v9, %v929_v27  ;;  %v939_v43 = vadd.f32 %v2055_v42, %v938_v34 }
 0x32b   :  { %v1134_v35 = vadd.f32 %v1133_v30, %v1132_v22  ;;  %v1136_v63 = vadd.f32 %v1135_v31, %v1069_v23  ;;  %v1154_v41 = vadd.f32 %v1153_v32, %v1072_v54  ;;  %v1074_v44 = vmul.f32 %v1058_v29, %v944_v33 }
 0x32c   :  { %v1127_v45 = vrot.slane %v1126_v36, 1  ;;  %v1144_v46 = vadd.f32 %v1143_v37, %v1142_v26  ;;  %v1147_v47 = vrot.slane %v1071_v38, 4  ;;  %v1073_v48 = vmul.f32 %v1051_v5, %v939_v43 }
 0x32d   :  { %v1137_v49 = vrot.slane %v1136_v63, 2  ;;  %v1155_v50 = vrot.slane %v1154_v41, 2  ;;  %v1165_v52 = vrot.slane %v1074_v44, 4  ;;  %v1122_v56 = vadd.f32 %v1121_v21, %v1120_v6  ;;  %v1690_v6 = vld [vmem:[%s2119_s0] sm:$0xff] }
 0x32e   :  { %v1128_v57 = vadd.f32 %v1127_v45, %v1126_v36  ;;  %v1148_v58 = vadd.f32 %v1147_v47, %v1071_v38  ;;  %v1159_v59 = vrot.slane %v1073_v48, 4  ;;  %v1198_v60 = vsel %vm1197_vm5, %v1116_v24, %v1196_v55  ;;  %v1691_v24 = vld [vmem:[%s2119_s0 + $0x8] sm:$0xff] }
 0x32f   :  { %v1138_v9 = vadd.f32 %v1137_v49, %v1136_v63  ;;  %v1156_v51 = vadd.f32 %v1155_v50, %v1154_v41  ;;  %v1166_v42 = vadd.f32 %v1165_v52, %v1074_v44  ;;  %v1145_v62 = vrot.slane %v1144_v46, 1 }
 0x330   :  { %v1201_v61 = vsel %vm1187_vm0, %v1134_v35, %v1128_v57  ;;  %v1149_v0 = vrot.slane %v1148_v58, 2  ;;  %v1160_v1 = vadd.f32 %v1159_v59, %v1073_v48  ;;  %v1200_v4 = vsel %vm1199_vm6, %v1122_v56, %v1198_v60 }
 0x331   :  { %v1139_v2 = vrot.slane %v1138_v9, 1  ;;  %v1167_v3 = vrot.slane %v1166_v42, 2  ;;  %v1210_v7 = vadd.f32 %v1690_v6, %v1200_v4  ;;  %v1157_v10 = vrot.slane %v1156_v51, 1 }
 0x332   :  { %v1150_v5 = vadd.f32 %v1149_v0, %v1148_v58  ;;  %v1161_v40 = vrot.slane %v1160_v1, 2  ;;  %v1146_v11 = vadd.f32 %v1145_v62, %v1144_v46 }
 0x333   :  { %v1140_v8 = vadd.f32 %v1139_v2, %v1138_v9  ;;  %v1168_v53 = vadd.f32 %v1167_v3, %v1166_v42  ;;  %1212 = vst [vmem:[#allocation11] sm:$0xff] %v1210_v7  ;;  %v1158_v18 = vadd.f32 %v1157_v10, %v1156_v51 }
 0x334   :  { %v1151_v12 = vrot.slane %v1150_v5, 1  ;;  %v1162_v13 = vadd.f32 %v1161_v40, %v1160_v1 }
 0x335   :  { %v1202_v14 = vsel %vm1189_vm1, %v1140_v8, %v1201_v61  ;;  %v1169_v15 = vrot.slane %v1168_v53, 1 }
 0x336   :  { %v1152_v16 = vadd.f32 %v1151_v12, %v1150_v5  ;;  %v1203_v39 = vsel %vm1191_vm2, %v1146_v11, %v1202_v14  ;;  %v1163_v17 = vrot.slane %v1162_v13, 1 }
 0x337   :  { %v1170_v21 = vadd.f32 %v1169_v15, %v1168_v53 }
 0x338   :  { %v1204_v19 = vsel %vm1193_vm3, %v1152_v16, %v1203_v39  ;;  %v1164_v20 = vadd.f32 %v1163_v17, %v1162_v13 }
 0x339   :  { %v1205_v22 = vsel %vm1195_vm4, %v1158_v18, %v1204_v19 }
 0x33a   :  { %v1206_v23 = vsel %vm1197_vm5, %v1164_v20, %v1205_v22 }
 0x33b   :  { %v1207_v54 = vsel %vm1199_vm6, %v1170_v21, %v1206_v23 }
 0x33c   :  { %v1211_v25 = vadd.f32 %v1691_v24, %v1207_v54 }
 0x33e   :  { %1213 = vst [vmem:[#allocation11 + $0x8] sm:$0xff] %v1211_v25 }
 0x33f   :  { %1813 = shalt.err (!%p1810_p2)
}
 0x340   :  { %s1814_s16 = scalar_lea.hbm %s2129_s10, 256 }
 0x341   :  { %p1815_p3 = scmp.ne.s32.totalorder %s2129_s10, %s1814_s16  ;;  %p1818_p4 = scmp.lt.u32.totalorder %s1814_s16, %s2129_s10 }
 0x343   :  { %p1820_p5 = pnand %p1818_p4, %p1815_p3 }
 0x345   :  { %1823 = shalt.err (!%p1820_p5)
}
 0x346   :  { %1225 = dma.vmem_to_hbm [thread:$0]  %s1220_s27, 256, %s2129_s10, [#allocation4], %s1834_s25, %s1834_s25, %s1835_s26  }
 0x347   :  { %1830 = dma.done.wait [#allocation4], 256  }
 0x348   :  { %1831 = vsyncadd [#allocation4], 4294967040 }
 0x349   :  { %1229 = vsyncpa [#allocation3], 1 }
 0x34a   :  { %1230 = vsyncpa [#allocation6], 1 }
 0x34b   :  { %1231 = vsyncpa [#allocation9], 1 }
 0x34c   :  { %1232 = vsyncpa [#allocation4], 1 }

</bundles_post_ra>
